<compile_context>
chip_gen: v7x
topology: tpu7x:2x2x1
jax: 0.10.0
libtpu: 0.0.40
codegen_flags: <defaults>
</compile_context>

<pallas_src>
import functools

import numpy as np
import jax
import jax.numpy as jnp
from jax import lax
from jax.experimental import pallas as pl
from jax.experimental.pallas import tpu as pltpu

_UNROLL_T_MAX = 32   # fully unroll the recurrence when T <= this


def _generator_kernel(z_ref, wih_ref, whh_ref, b_ref, wgen_ref, bgen_ref,
                      out_ref, *scratch, seq_len, batch_pad, hidden):
    """Full forward pass: hoisted input projection + LSTM recurrence + head.

    z_ref    : (T*Bp, Lp)   time-major flattened input (B and L zero-padded)
    wih_ref  : (Lp, 4H)     input->gates weight (transposed, gate-permuted)
    whh_ref  : (H, 4H)      hidden->gates weight (transposed, gate-permuted)
    b_ref    : (1, 4H)      b_ih + b_hh (gate-permuted)
    wgen_ref : (H, Fp)      output projection weight (transposed, lane-padded)
    bgen_ref : (1, Fp)      output projection bias (lane-padded)
    out_ref  : (T*Bp, Fp)   sigmoid-activated outputs (time-major flattened)
    scratch[0] : (T*Bp, 4H) VMEM: hoisted input projection
    scratch[1] : (T*Bp, H)  VMEM: h history (only present on the rolled path)
    """
    T, Bp, H = seq_len, batch_pad, hidden
    zproj_sc = scratch[0]
    hbuf_sc = scratch[1] if len(scratch) > 1 else None

    # ---- Phase 1: hoisted input projection -- ONE big MXU matmul, off the
    # recurrent critical path.  The combined bias is folded in here once.
    zproj_sc[...] = (
        jnp.dot(z_ref[...], wih_ref[...], preferred_element_type=jnp.float32)
        + b_ref[...])                                          # (T*Bp, 4H)

    # Hoist the recurrent weight / head operand loads out of the loop body.
    whh = whh_ref[...]                                         # (H, 4H)

    h0 = jnp.zeros((Bp, H), jnp.float32)
    c0 = jnp.zeros((Bp, H), jnp.float32)

    def cell(x_gates, h, c):
        gates = x_gates + jnp.dot(h, whh, preferred_element_type=jnp.float32)
        # Gate order after column permutation: [i, f, o, g].
        # One sigmoid over lanes [0:3H], one tanh over [3H:4H].
        sig = jax.nn.sigmoid(gates[:, 0:3 * H])
        g_g = jnp.tanh(gates[:, 3 * H:4 * H])
        i_g = sig[:, 0 * H:1 * H]
        f_g = sig[:, 1 * H:2 * H]
        o_g = sig[:, 2 * H:3 * H]
        c_new = f_g * c + i_g * g_g
        h_new = o_g * jnp.tanh(c_new)
        return h_new, c_new

    if T <= _UNROLL_T_MAX:
        # ---- Phase 2a: fully unrolled recurrence; h/c AND the h-history stay
        # in vregs (no per-step VMEM stores, no scratch round trip).
        h, c = h0, c0
        hs = []
        for t in range(T):
            x_g = zproj_sc[t * Bp:(t + 1) * Bp, :]             # aligned static slice
            h, c = cell(x_g, h, c)
            hs.append(h)
        h_all = jnp.concatenate(hs, axis=0)                    # (T*Bp, H)
    else:
        # ---- Phase 2b: rolled recurrence; h/c carried as loop values, history
        # written to an aligned VMEM scratch (Bp is a multiple of 8, so the
        # multiple_of hint is real and every store is sublane-tile aligned).
        def step(t, carry):
            h, c = carry
            r0 = pl.multiple_of(t * Bp, Bp)
            h, c = cell(zproj_sc[pl.ds(r0, Bp), :], h, c)
            hbuf_sc[pl.ds(r0, Bp), :] = h
            return (h, c)

        lax.fori_loop(0, T, step, (h0, c0), unroll=4)
        h_all = hbuf_sc[...]

    # ---- Phase 3: batched output head (Linear + Sigmoid), one matmul and one
    # lane-dense (128-wide) store.
    out_ref[...] = jax.nn.sigmoid(
        jnp.dot(h_all, wgen_ref[...], preferred_element_type=jnp.float32)
        + bgen_ref[...])


def _round_up(x, m):
    return ((x + m - 1) // m) * m


def generator_forward(Z, kparams):
    """Z: (B, T, latent) float32 -> (B, T, n_features) float32."""
    B, T, L = Z.shape
    H = kparams["whh_t"].shape[0]
    F = kparams["n_features"]
    Lp = kparams["wih_t"].shape[0]          # padded latent (multiple of 128)
    Fp = kparams["wgen_t"].shape[1]         # padded feature width (128)
    Bp = _round_up(B, 8)                    # padded batch (sublane tile)

    # Time-major, batch/lane padded layout: rows ordered (t, b_pad), so each
    # timestep is a contiguous, (8,128)-aligned sublane window in the kernel.
    z_tm = jnp.transpose(Z, (1, 0, 2))                           # (T, B, L)
    z_tm = jnp.pad(z_tm, ((0, 0), (0, Bp - B), (0, Lp - L)))     # (T, Bp, Lp)
    z_tm = z_tm.reshape(T * Bp, Lp)

    vmem = pl.BlockSpec(memory_space=pltpu.MemorySpace.VMEM)
    kernel = functools.partial(_generator_kernel, seq_len=T, batch_pad=Bp, hidden=H)

    scratch_shapes = [pltpu.VMEM((T * Bp, 4 * H), jnp.float32)]  # hoisted input proj
    if T > _UNROLL_T_MAX:
        scratch_shapes.append(pltpu.VMEM((T * Bp, H), jnp.float32))  # h history

    # Size the scoped VMEM limit from the real working set (with headroom).
    rows = T * Bp
    working = 4 * (rows * Lp + rows * 4 * H + rows * Fp + rows * H
                   + Lp * 4 * H + H * 4 * H + 4 * H + H * Fp + Fp)
    vmem_limit = int(min(64 * 1024 * 1024, max(4 * 1024 * 1024, 2 * working)))

    out_tm = pl.pallas_call(
        kernel,
        out_shape=jax.ShapeDtypeStruct((T * Bp, Fp), jnp.float32),
        in_specs=[vmem] * 6,
        out_specs=vmem,
        scratch_shapes=scratch_shapes,
        compiler_params=pltpu.CompilerParams(vmem_limit_bytes=vmem_limit),
    )(z_tm, kparams["wih_t"], kparams["whh_t"], kparams["b"],
      kparams["wgen_t"], kparams["bgen"])

    out = out_tm.reshape(T, Bp, Fp)[:, :B, :F]                   # strip padding
    return jnp.transpose(out, (1, 0, 2))                         # (B, T, F)


def init_params(key, latent=100, n_hidden=32, n_features=5):
    """Raw PyTorch-layout parameters (uniform(-1/sqrt(H), 1/sqrt(H)) init)."""
    ks = jax.random.split(key, 6)
    k = 1.0 / np.sqrt(n_hidden)
    u = lambda kk, shape, bound: jax.random.uniform(
        kk, shape, jnp.float32, minval=-bound, maxval=bound)
    return {
        "w_ih": u(ks[0], (4 * n_hidden, latent), k),      # PyTorch weight_ih_l0
        "w_hh": u(ks[1], (4 * n_hidden, n_hidden), k),    # PyTorch weight_hh_l0
        "b_ih": u(ks[2], (4 * n_hidden,), k),
        "b_hh": u(ks[3], (4 * n_hidden,), k),
        "w_gen": u(ks[4], (n_features, n_hidden), k),     # nn.Linear(n_hidden, n_features)
        "b_gen": u(ks[5], (n_features,), k),
    }
    # TODO(synk): self.latent = nn.Linear(latent, 128) is defined in the module
    # but never used in forward(), so it is intentionally not materialized.


def prepare_kernel_params(raw, latent=100, n_features=5):
    """Gate-permute ([i,f,g,o] -> [i,f,o,g]), transpose and pad for the kernel."""
    H = raw["w_hh"].shape[1]
    Lp = _round_up(latent, 128)
    Fp = _round_up(n_features, 128)
    perm = np.concatenate([np.arange(0, H), np.arange(H, 2 * H),
                           np.arange(3 * H, 4 * H), np.arange(2 * H, 3 * H)])

    wih_t = raw["w_ih"].T[:, perm]                                  # (L, 4H)
    wih_t = jnp.pad(wih_t, ((0, Lp - latent), (0, 0)))              # (Lp, 4H)
    whh_t = raw["w_hh"].T[:, perm]                                  # (H, 4H)
    b = (raw["b_ih"] + raw["b_hh"])[perm].reshape(1, -1)            # (1, 4H)
    wgen_t = jnp.pad(raw["w_gen"].T, ((0, 0), (0, Fp - n_features)))  # (H, Fp)
    bgen = jnp.pad(raw["b_gen"].reshape(1, -1),
                   ((0, 0), (0, Fp - n_features)))                  # (1, Fp)
    return {
        "wih_t": jnp.asarray(wih_t),
        "whh_t": jnp.asarray(whh_t),
        "b": jnp.asarray(b),
        "wgen_t": jnp.asarray(wgen_t),
        "bgen": jnp.asarray(bgen),
        "n_features": n_features,
    }


def generator_reference(Z, raw):
    """Pure-JAX reference of the same forward pass (PyTorch gate order)."""
    H = raw["w_hh"].shape[1]
    wih_t = raw["w_ih"].T
    whh_t = raw["w_hh"].T
    b = (raw["b_ih"] + raw["b_hh"]).reshape(1, -1)

    def cell(carry, x_t):
        h, c = carry
        gates = x_t @ wih_t + h @ whh_t + b
        i_g = jax.nn.sigmoid(gates[:, 0 * H:1 * H])
        f_g = jax.nn.sigmoid(gates[:, 1 * H:2 * H])
        g_g = jnp.tanh(gates[:, 2 * H:3 * H])
        o_g = jax.nn.sigmoid(gates[:, 3 * H:4 * H])
        c_new = f_g * c + i_g * g_g
        h_new = o_g * jnp.tanh(c_new)
        return (h_new, c_new), h_new

    B = Z.shape[0]
    h0 = jnp.zeros((B, H), jnp.float32)
    c0 = jnp.zeros((B, H), jnp.float32)
    _, hs = lax.scan(cell, (h0, c0), jnp.transpose(Z, (1, 0, 2)))   # (T, B, H)
    out = jax.nn.sigmoid(hs @ raw["w_gen"].T + raw["b_gen"])        # (T, B, F)
    return jnp.transpose(out, (1, 0, 2))


if __name__ == "__main__":
    latent, n_hidden, n_features = 100, 32, 5
    B, T = 2, 8

    key = jax.random.PRNGKey(0)
    kz, kp = jax.random.split(key)
    Z = jax.random.normal(kz, (B, T, latent), dtype=jnp.float32)

    raw = init_params(kp, latent=latent, n_hidden=n_hidden, n_features=n_features)
    kparams = prepare_kernel_params(raw, latent=latent, n_features=n_features)

    out = generator_forward(Z, kparams)
    out = jax.block_until_ready(out)

    ref = jax.block_until_ready(generator_reference(Z, raw))
    assert out.shape == (B, T, n_features)
    np.testing.assert_allclose(np.asarray(out), np.asarray(ref), rtol=1e-5, atol=1e-5)

    print("KERNEL_OK")
</pallas_src>

<mosaic_0001>
module attributes {stable_mosaic.version = 11 : i64} {
  func.func @_generator_kernel(%arg0: memref<64x128xf32, #tpu.memory_space<vmem>>, %arg1: memref<128x128xf32, #tpu.memory_space<vmem>>, %arg2: memref<32x128xf32, #tpu.memory_space<vmem>>, %arg3: memref<1x128xf32, #tpu.memory_space<vmem>>, %arg4: memref<32x128xf32, #tpu.memory_space<vmem>>, %arg5: memref<1x128xf32, #tpu.memory_space<vmem>>, %arg6: memref<64x128xf32, #tpu.memory_space<vmem>>, %arg7: memref<64x128xf32, #tpu.memory_space<vmem>>) attributes {dimension_semantics = [], scalar_prefetch = 0 : i64, scratch_operands = 1 : i64, tpu.core_type = #tpu.core_type<tc>} {
    %c0 = arith.constant 0 : index
    %c0_0 = arith.constant 0 : index
    %0 = vector.load %arg0[%c0, %c0_0] : memref<64x128xf32, #tpu.memory_space<vmem>>, vector<64x128xf32>
    %c0_1 = arith.constant 0 : index
    %c0_2 = arith.constant 0 : index
    %1 = vector.load %arg1[%c0_1, %c0_2] : memref<128x128xf32, #tpu.memory_space<vmem>>, vector<128x128xf32>
    %cst = arith.constant dense<0.000000e+00> : vector<64x128xf32>
    %2 = tpu.matmul %0, %1, %cst {dimension_numbers = #tpu.dot_dimension_numbers<[1], [0], [0], [1], [0, 0, 1, 1], [], []>} : vector<64x128xf32>, vector<128x128xf32>, vector<64x128xf32> -> vector<64x128xf32>
    %c0_3 = arith.constant 0 : index
    %c0_4 = arith.constant 0 : index
    %3 = vector.load %arg3[%c0_3, %c0_4] : memref<1x128xf32, #tpu.memory_space<vmem>>, vector<1x128xf32>
    %4 = vector.broadcast %3 : vector<1x128xf32> to vector<64x128xf32>
    %5 = arith.addf %2, %4 : vector<64x128xf32>
    %c0_5 = arith.constant 0 : index
    %c0_6 = arith.constant 0 : index
    %6 = vector.load %arg7[%c0_5, %c0_6] : memref<64x128xf32, #tpu.memory_space<vmem>>, vector<64x128xf32>
    tpu.vector_store %arg7[%c0_5, %c0_6], %5 {strides = array<i32>} : memref<64x128xf32, #tpu.memory_space<vmem>>, vector<64x128xf32>,
    %c0_7 = arith.constant 0 : index
    %c0_8 = arith.constant 0 : index
    %7 = vector.load %arg2[%c0_7, %c0_8] : memref<32x128xf32, #tpu.memory_space<vmem>>, vector<32x128xf32>
    %cst_9 = arith.constant 0.000000e+00 : f32
    %8 = vector.broadcast %cst_9 : f32 to vector<8x32xf32>
    %cst_10 = arith.constant 0.000000e+00 : f32
    %9 = vector.broadcast %cst_10 : f32 to vector<8x32xf32>
    %c0_11 = arith.constant 0 : index
    %c0_12 = arith.constant 0 : index
    %10 = vector.load %arg7[%c0_11, %c0_12] : memref<64x128xf32, #tpu.memory_space<vmem>>, vector<8x128xf32>
    %cst_13 = arith.constant dense<0.000000e+00> : vector<8x128xf32>
    %11 = tpu.matmul %8, %7, %cst_13 {dimension_numbers = #tpu.dot_dimension_numbers<[1], [0], [0], [1], [0, 0, 1, 1], [], []>} : vector<8x32xf32>, vector<32x128xf32>, vector<8x128xf32> -> vector<8x128xf32>
    %12 = arith.addf %10, %11 : vector<8x128xf32>
    %13 = vector.extract_strided_slice %12 {offsets = [0, 0], sizes = [8, 96], strides = [1, 1]} : vector<8x128xf32> to vector<8x96xf32>
    %14 = arith.negf %13 : vector<8x96xf32>
    %15 = math.exp %14 : vector<8x96xf32>
    %cst_14 = arith.constant 1.000000e+00 : f32
    %16 = vector.broadcast %cst_14 : f32 to vector<8x96xf32>
    %17 = arith.addf %16, %15 : vector<8x96xf32>
    %18 = arith.divf %16, %17 : vector<8x96xf32>
    %19 = vector.extract_strided_slice %12 {offsets = [0, 96], sizes = [8, 32], strides = [1, 1]} : vector<8x128xf32> to vector<8x32xf32>
    %20 = math.tanh %19 : vector<8x32xf32>
    %21 = vector.extract_strided_slice %18 {offsets = [0, 0], sizes = [8, 32], strides = [1, 1]} : vector<8x96xf32> to vector<8x32xf32>
    %22 = vector.extract_strided_slice %18 {offsets = [0, 32], sizes = [8, 32], strides = [1, 1]} : vector<8x96xf32> to vector<8x32xf32>
    %23 = vector.extract_strided_slice %18 {offsets = [0, 64], sizes = [8, 32], strides = [1, 1]} : vector<8x96xf32> to vector<8x32xf32>
    %24 = arith.mulf %22, %9 : vector<8x32xf32>
    %25 = arith.mulf %21, %20 : vector<8x32xf32>
    %26 = arith.addf %24, %25 : vector<8x32xf32>
    %27 = math.tanh %26 : vector<8x32xf32>
    %28 = arith.mulf %23, %27 : vector<8x32xf32>
    %c8 = arith.constant 8 : index
    %c0_15 = arith.constant 0 : index
    %29 = vector.load %arg7[%c8, %c0_15] : memref<64x128xf32, #tpu.memory_space<vmem>>, vector<8x128xf32>
    %cst_16 = arith.constant dense<0.000000e+00> : vector<8x128xf32>
    %30 = tpu.matmul %28, %7, %cst_16 {dimension_numbers = #tpu.dot_dimension_numbers<[1], [0], [0], [1], [0, 0, 1, 1], [], []>} : vector<8x32xf32>, vector<32x128xf32>, vector<8x128xf32> -> vector<8x128xf32>
    %31 = arith.addf %29, %30 : vector<8x128xf32>
    %32 = vector.extract_strided_slice %31 {offsets = [0, 0], sizes = [8, 96], strides = [1, 1]} : vector<8x128xf32> to vector<8x96xf32>
    %33 = arith.negf %32 : vector<8x96xf32>
    %34 = math.exp %33 : vector<8x96xf32>
    %cst_17 = arith.constant 1.000000e+00 : f32
    %35 = vector.broadcast %cst_17 : f32 to vector<8x96xf32>
    %36 = arith.addf %35, %34 : vector<8x96xf32>
    %37 = arith.divf %35, %36 : vector<8x96xf32>
    %38 = vector.extract_strided_slice %31 {offsets = [0, 96], sizes = [8, 32], strides = [1, 1]} : vector<8x128xf32> to vector<8x32xf32>
    %39 = math.tanh %38 : vector<8x32xf32>
    %40 = vector.extract_strided_slice %37 {offsets = [0, 0], sizes = [8, 32], strides = [1, 1]} : vector<8x96xf32> to vector<8x32xf32>
    %41 = vector.extract_strided_slice %37 {offsets = [0, 32], sizes = [8, 32], strides = [1, 1]} : vector<8x96xf32> to vector<8x32xf32>
    %42 = vector.extract_strided_slice %37 {offsets = [0, 64], sizes = [8, 32], strides = [1, 1]} : vector<8x96xf32> to vector<8x32xf32>
    %43 = arith.mulf %41, %26 : vector<8x32xf32>
    %44 = arith.mulf %40, %39 : vector<8x32xf32>
    %45 = arith.addf %43, %44 : vector<8x32xf32>
    %46 = math.tanh %45 : vector<8x32xf32>
    %47 = arith.mulf %42, %46 : vector<8x32xf32>
    %c16 = arith.constant 16 : index
    %c0_18 = arith.constant 0 : index
    %48 = vector.load %arg7[%c16, %c0_18] : memref<64x128xf32, #tpu.memory_space<vmem>>, vector<8x128xf32>
    %cst_19 = arith.constant dense<0.000000e+00> : vector<8x128xf32>
    %49 = tpu.matmul %47, %7, %cst_19 {dimension_numbers = #tpu.dot_dimension_numbers<[1], [0], [0], [1], [0, 0, 1, 1], [], []>} : vector<8x32xf32>, vector<32x128xf32>, vector<8x128xf32> -> vector<8x128xf32>
    %50 = arith.addf %48, %49 : vector<8x128xf32>
    %51 = vector.extract_strided_slice %50 {offsets = [0, 0], sizes = [8, 96], strides = [1, 1]} : vector<8x128xf32> to vector<8x96xf32>
    %52 = arith.negf %51 : vector<8x96xf32>
    %53 = math.exp %52 : vector<8x96xf32>
    %cst_20 = arith.constant 1.000000e+00 : f32
    %54 = vector.broadcast %cst_20 : f32 to vector<8x96xf32>
    %55 = arith.addf %54, %53 : vector<8x96xf32>
    %56 = arith.divf %54, %55 : vector<8x96xf32>
    %57 = vector.extract_strided_slice %50 {offsets = [0, 96], sizes = [8, 32], strides = [1, 1]} : vector<8x128xf32> to vector<8x32xf32>
    %58 = math.tanh %57 : vector<8x32xf32>
    %59 = vector.extract_strided_slice %56 {offsets = [0, 0], sizes = [8, 32], strides = [1, 1]} : vector<8x96xf32> to vector<8x32xf32>
    %60 = vector.extract_strided_slice %56 {offsets = [0, 32], sizes = [8, 32], strides = [1, 1]} : vector<8x96xf32> to vector<8x32xf32>
    %61 = vector.extract_strided_slice %56 {offsets = [0, 64], sizes = [8, 32], strides = [1, 1]} : vector<8x96xf32> to vector<8x32xf32>
    %62 = arith.mulf %60, %45 : vector<8x32xf32>
    %63 = arith.mulf %59, %58 : vector<8x32xf32>
    %64 = arith.addf %62, %63 : vector<8x32xf32>
    %65 = math.tanh %64 : vector<8x32xf32>
    %66 = arith.mulf %61, %65 : vector<8x32xf32>
    %c24 = arith.constant 24 : index
    %c0_21 = arith.constant 0 : index
    %67 = vector.load %arg7[%c24, %c0_21] : memref<64x128xf32, #tpu.memory_space<vmem>>, vector<8x128xf32>
    %cst_22 = arith.constant dense<0.000000e+00> : vector<8x128xf32>
    %68 = tpu.matmul %66, %7, %cst_22 {dimension_numbers = #tpu.dot_dimension_numbers<[1], [0], [0], [1], [0, 0, 1, 1], [], []>} : vector<8x32xf32>, vector<32x128xf32>, vector<8x128xf32> -> vector<8x128xf32>
    %69 = arith.addf %67, %68 : vector<8x128xf32>
    %70 = vector.extract_strided_slice %69 {offsets = [0, 0], sizes = [8, 96], strides = [1, 1]} : vector<8x128xf32> to vector<8x96xf32>
    %71 = arith.negf %70 : vector<8x96xf32>
    %72 = math.exp %71 : vector<8x96xf32>
    %cst_23 = arith.constant 1.000000e+00 : f32
    %73 = vector.broadcast %cst_23 : f32 to vector<8x96xf32>
    %74 = arith.addf %73, %72 : vector<8x96xf32>
    %75 = arith.divf %73, %74 : vector<8x96xf32>
    %76 = vector.extract_strided_slice %69 {offsets = [0, 96], sizes = [8, 32], strides = [1, 1]} : vector<8x128xf32> to vector<8x32xf32>
    %77 = math.tanh %76 : vector<8x32xf32>
    %78 = vector.extract_strided_slice %75 {offsets = [0, 0], sizes = [8, 32], strides = [1, 1]} : vector<8x96xf32> to vector<8x32xf32>
    %79 = vector.extract_strided_slice %75 {offsets = [0, 32], sizes = [8, 32], strides = [1, 1]} : vector<8x96xf32> to vector<8x32xf32>
    %80 = vector.extract_strided_slice %75 {offsets = [0, 64], sizes = [8, 32], strides = [1, 1]} : vector<8x96xf32> to vector<8x32xf32>
    %81 = arith.mulf %79, %64 : vector<8x32xf32>
    %82 = arith.mulf %78, %77 : vector<8x32xf32>
    %83 = arith.addf %81, %82 : vector<8x32xf32>
    %84 = math.tanh %83 : vector<8x32xf32>
    %85 = arith.mulf %80, %84 : vector<8x32xf32>
    %c32 = arith.constant 32 : index
    %c0_24 = arith.constant 0 : index
    %86 = vector.load %arg7[%c32, %c0_24] : memref<64x128xf32, #tpu.memory_space<vmem>>, vector<8x128xf32>
    %cst_25 = arith.constant dense<0.000000e+00> : vector<8x128xf32>
    %87 = tpu.matmul %85, %7, %cst_25 {dimension_numbers = #tpu.dot_dimension_numbers<[1], [0], [0], [1], [0, 0, 1, 1], [], []>} : vector<8x32xf32>, vector<32x128xf32>, vector<8x128xf32> -> vector<8x128xf32>
    %88 = arith.addf %86, %87 : vector<8x128xf32>
    %89 = vector.extract_strided_slice %88 {offsets = [0, 0], sizes = [8, 96], strides = [1, 1]} : vector<8x128xf32> to vector<8x96xf32>
    %90 = arith.negf %89 : vector<8x96xf32>
    %91 = math.exp %90 : vector<8x96xf32>
    %cst_26 = arith.constant 1.000000e+00 : f32
    %92 = vector.broadcast %cst_26 : f32 to vector<8x96xf32>
    %93 = arith.addf %92, %91 : vector<8x96xf32>
    %94 = arith.divf %92, %93 : vector<8x96xf32>
    %95 = vector.extract_strided_slice %88 {offsets = [0, 96], sizes = [8, 32], strides = [1, 1]} : vector<8x128xf32> to vector<8x32xf32>
    %96 = math.tanh %95 : vector<8x32xf32>
    %97 = vector.extract_strided_slice %94 {offsets = [0, 0], sizes = [8, 32], strides = [1, 1]} : vector<8x96xf32> to vector<8x32xf32>
    %98 = vector.extract_strided_slice %94 {offsets = [0, 32], sizes = [8, 32], strides = [1, 1]} : vector<8x96xf32> to vector<8x32xf32>
    %99 = vector.extract_strided_slice %94 {offsets = [0, 64], sizes = [8, 32], strides = [1, 1]} : vector<8x96xf32> to vector<8x32xf32>
    %100 = arith.mulf %98, %83 : vector<8x32xf32>
    %101 = arith.mulf %97, %96 : vector<8x32xf32>
    %102 = arith.addf %100, %101 : vector<8x32xf32>
    %103 = math.tanh %102 : vector<8x32xf32>
    %104 = arith.mulf %99, %103 : vector<8x32xf32>
    %c40 = arith.constant 40 : index
    %c0_27 = arith.constant 0 : index
    %105 = vector.load %arg7[%c40, %c0_27] : memref<64x128xf32, #tpu.memory_space<vmem>>, vector<8x128xf32>
    %cst_28 = arith.constant dense<0.000000e+00> : vector<8x128xf32>
    %106 = tpu.matmul %104, %7, %cst_28 {dimension_numbers = #tpu.dot_dimension_numbers<[1], [0], [0], [1], [0, 0, 1, 1], [], []>} : vector<8x32xf32>, vector<32x128xf32>, vector<8x128xf32> -> vector<8x128xf32>
    %107 = arith.addf %105, %106 : vector<8x128xf32>
    %108 = vector.extract_strided_slice %107 {offsets = [0, 0], sizes = [8, 96], strides = [1, 1]} : vector<8x128xf32> to vector<8x96xf32>
    %109 = arith.negf %108 : vector<8x96xf32>
    %110 = math.exp %109 : vector<8x96xf32>
    %cst_29 = arith.constant 1.000000e+00 : f32
    %111 = vector.broadcast %cst_29 : f32 to vector<8x96xf32>
    %112 = arith.addf %111, %110 : vector<8x96xf32>
    %113 = arith.divf %111, %112 : vector<8x96xf32>
    %114 = vector.extract_strided_slice %107 {offsets = [0, 96], sizes = [8, 32], strides = [1, 1]} : vector<8x128xf32> to vector<8x32xf32>
    %115 = math.tanh %114 : vector<8x32xf32>
    %116 = vector.extract_strided_slice %113 {offsets = [0, 0], sizes = [8, 32], strides = [1, 1]} : vector<8x96xf32> to vector<8x32xf32>
    %117 = vector.extract_strided_slice %113 {offsets = [0, 32], sizes = [8, 32], strides = [1, 1]} : vector<8x96xf32> to vector<8x32xf32>
    %118 = vector.extract_strided_slice %113 {offsets = [0, 64], sizes = [8, 32], strides = [1, 1]} : vector<8x96xf32> to vector<8x32xf32>
    %119 = arith.mulf %117, %102 : vector<8x32xf32>
    %120 = arith.mulf %116, %115 : vector<8x32xf32>
    %121 = arith.addf %119, %120 : vector<8x32xf32>
    %122 = math.tanh %121 : vector<8x32xf32>
    %123 = arith.mulf %118, %122 : vector<8x32xf32>
    %c48 = arith.constant 48 : index
    %c0_30 = arith.constant 0 : index
    %124 = vector.load %arg7[%c48, %c0_30] : memref<64x128xf32, #tpu.memory_space<vmem>>, vector<8x128xf32>
    %cst_31 = arith.constant dense<0.000000e+00> : vector<8x128xf32>
    %125 = tpu.matmul %123, %7, %cst_31 {dimension_numbers = #tpu.dot_dimension_numbers<[1], [0], [0], [1], [0, 0, 1, 1], [], []>} : vector<8x32xf32>, vector<32x128xf32>, vector<8x128xf32> -> vector<8x128xf32>
    %126 = arith.addf %124, %125 : vector<8x128xf32>
    %127 = vector.extract_strided_slice %126 {offsets = [0, 0], sizes = [8, 96], strides = [1, 1]} : vector<8x128xf32> to vector<8x96xf32>
    %128 = arith.negf %127 : vector<8x96xf32>
    %129 = math.exp %128 : vector<8x96xf32>
    %cst_32 = arith.constant 1.000000e+00 : f32
    %130 = vector.broadcast %cst_32 : f32 to vector<8x96xf32>
    %131 = arith.addf %130, %129 : vector<8x96xf32>
    %132 = arith.divf %130, %131 : vector<8x96xf32>
    %133 = vector.extract_strided_slice %126 {offsets = [0, 96], sizes = [8, 32], strides = [1, 1]} : vector<8x128xf32> to vector<8x32xf32>
    %134 = math.tanh %133 : vector<8x32xf32>
    %135 = vector.extract_strided_slice %132 {offsets = [0, 0], sizes = [8, 32], strides = [1, 1]} : vector<8x96xf32> to vector<8x32xf32>
    %136 = vector.extract_strided_slice %132 {offsets = [0, 32], sizes = [8, 32], strides = [1, 1]} : vector<8x96xf32> to vector<8x32xf32>
    %137 = vector.extract_strided_slice %132 {offsets = [0, 64], sizes = [8, 32], strides = [1, 1]} : vector<8x96xf32> to vector<8x32xf32>
    %138 = arith.mulf %136, %121 : vector<8x32xf32>
    %139 = arith.mulf %135, %134 : vector<8x32xf32>
    %140 = arith.addf %138, %139 : vector<8x32xf32>
    %141 = math.tanh %140 : vector<8x32xf32>
    %142 = arith.mulf %137, %141 : vector<8x32xf32>
    %c56 = arith.constant 56 : index
    %c0_33 = arith.constant 0 : index
    %143 = vector.load %arg7[%c56, %c0_33] : memref<64x128xf32, #tpu.memory_space<vmem>>, vector<8x128xf32>
    %cst_34 = arith.constant dense<0.000000e+00> : vector<8x128xf32>
    %144 = tpu.matmul %142, %7, %cst_34 {dimension_numbers = #tpu.dot_dimension_numbers<[1], [0], [0], [1], [0, 0, 1, 1], [], []>} : vector<8x32xf32>, vector<32x128xf32>, vector<8x128xf32> -> vector<8x128xf32>
    %145 = arith.addf %143, %144 : vector<8x128xf32>
    %146 = vector.extract_strided_slice %145 {offsets = [0, 0], sizes = [8, 96], strides = [1, 1]} : vector<8x128xf32> to vector<8x96xf32>
    %147 = arith.negf %146 : vector<8x96xf32>
    %148 = math.exp %147 : vector<8x96xf32>
    %cst_35 = arith.constant 1.000000e+00 : f32
    %149 = vector.broadcast %cst_35 : f32 to vector<8x96xf32>
    %150 = arith.addf %149, %148 : vector<8x96xf32>
    %151 = arith.divf %149, %150 : vector<8x96xf32>
    %152 = vector.extract_strided_slice %145 {offsets = [0, 96], sizes = [8, 32], strides = [1, 1]} : vector<8x128xf32> to vector<8x32xf32>
    %153 = math.tanh %152 : vector<8x32xf32>
    %154 = vector.extract_strided_slice %151 {offsets = [0, 0], sizes = [8, 32], strides = [1, 1]} : vector<8x96xf32> to vector<8x32xf32>
    %155 = vector.extract_strided_slice %151 {offsets = [0, 32], sizes = [8, 32], strides = [1, 1]} : vector<8x96xf32> to vector<8x32xf32>
    %156 = vector.extract_strided_slice %151 {offsets = [0, 64], sizes = [8, 32], strides = [1, 1]} : vector<8x96xf32> to vector<8x32xf32>
    %157 = arith.mulf %155, %140 : vector<8x32xf32>
    %158 = arith.mulf %154, %153 : vector<8x32xf32>
    %159 = arith.addf %157, %158 : vector<8x32xf32>
    %160 = math.tanh %159 : vector<8x32xf32>
    %161 = arith.mulf %156, %160 : vector<8x32xf32>
    %162 = tpu.concatenate %28, %47, %66, %85, %104, %123, %142, %161 in 0 : vector<8x32xf32>, vector<8x32xf32>, vector<8x32xf32>, vector<8x32xf32>, vector<8x32xf32>, vector<8x32xf32>, vector<8x32xf32>, vector<8x32xf32> -> vector<64x32xf32>
    %c0_36 = arith.constant 0 : index
    %c0_37 = arith.constant 0 : index
    %163 = vector.load %arg4[%c0_36, %c0_37] : memref<32x128xf32, #tpu.memory_space<vmem>>, vector<32x128xf32>
    %cst_38 = arith.constant dense<0.000000e+00> : vector<64x128xf32>
    %164 = tpu.matmul %162, %163, %cst_38 {dimension_numbers = #tpu.dot_dimension_numbers<[1], [0], [0], [1], [0, 0, 1, 1], [], []>} : vector<64x32xf32>, vector<32x128xf32>, vector<64x128xf32> -> vector<64x128xf32>
    %c0_39 = arith.constant 0 : index
    %c0_40 = arith.constant 0 : index
    %165 = vector.load %arg5[%c0_39, %c0_40] : memref<1x128xf32, #tpu.memory_space<vmem>>, vector<1x128xf32>
    %166 = vector.broadcast %165 : vector<1x128xf32> to vector<64x128xf32>
    %167 = arith.addf %164, %166 : vector<64x128xf32>
    %168 = arith.negf %167 : vector<64x128xf32>
    %169 = math.exp %168 : vector<64x128xf32>
    %cst_41 = arith.constant 1.000000e+00 : f32
    %170 = vector.broadcast %cst_41 : f32 to vector<64x128xf32>
    %171 = arith.addf %170, %169 : vector<64x128xf32>
    %172 = arith.divf %170, %171 : vector<64x128xf32>
    %c0_42 = arith.constant 0 : index
    %c0_43 = arith.constant 0 : index
    %173 = vector.load %arg6[%c0_42, %c0_43] : memref<64x128xf32, #tpu.memory_space<vmem>>, vector<64x128xf32>
    tpu.vector_store %arg6[%c0_42, %c0_43], %172 {strides = array<i32>} : memref<64x128xf32, #tpu.memory_space<vmem>>, vector<64x128xf32>,
    return
  }
}

</mosaic_0001>

<bundles_post_ra>
// kernel: tpu_custom_call.1
= control target key start
LH: loop header
LB: loop body
LE: loop exit
PB: predicated region body
PF: predicated region fallthrough
CT: control target
= control target key end

     0   :  { %11 = vsyncpa [#allocation4], 0  ;;  %s2095_s0 = inlined_call_operand.hbm [shape: f32[64,128], index: 0, kind: input, shape index: {}]   ;;  %s2096_s1 = inlined_call_operand.hbm [shape: f32[128,128], index: 1, kind: input, shape index: {}]   ;;  %s2097_s2 = inlined_call_operand.hbm [shape: f32[32,128], index: 2, kind: input, shape index: {}]   ;;  %s2098_s3 = inlined_call_operand.vmem [shape: f32[1,128], index: 3, kind: input, shape index: {}]   ;;  %s2099_s4 = inlined_call_operand.hbm [shape: f32[32,128], index: 4, kind: input, shape index: {}]   ;;  %s2100_s5 = inlined_call_operand.vmem [shape: f32[1,128], index: 5, kind: input, shape index: {}]   ;;  %s2101_s6 = inlined_call_operand.hbm [shape: f32[64,128], index: 6, kind: output, shape index: {}]  }
   0x1   :  { %12 = vsyncpa [#allocation7], 0 }
   0x2   :  { %13 = vsyncpa [#allocation10], 0 }
   0x3   :  { %14 = vsyncpa [#allocation5], 0  ;;  %s1805_s21 = smov [#allocation6]   ;;  %s1806_s23 = smov [#allocation3]  }
   0x4   :  { %s32_s22 = sshll.u32 %s1805_s21, 4  ;;  %s20_s24 = sshll.u32 %s1806_s23, 4  ;;  %s33_s22 = int_to_ptr.vmem [resolvable:$true] %s32_s22  ;;  %s1852_s24 = int_to_ptr.vmem [resolvable:$true] %s20_s24 }
   0x5   :  { %s1687_s27 = scalar_lea.hbm %s2096_s1, 2048 }
   0x6   :  { %p1688_p0 = scmp.ne.s32.totalorder %s2096_s1, %s1687_s27  ;;  %p1691_p1 = scmp.lt.u32.totalorder %s1687_s27, %s2096_s1 }
   0x8   :  { %p1693_p2 = pnand %p1691_p1, %p1688_p0 }
   0xa   :  { %1696 = shalt.err (!%p1693_p2)
}
   0xb   :  { %s1697_s8 = scalar_lea.vmem %s33_s22, 2048  ;;  %p1702_p4 = scmp.lt.s32.totalorder %s33_s22, %s33_s22 }
   0xc   :  { %p1698_p3 = scmp.ne.s32.totalorder %s33_s22, %s1697_s8  ;;  %p1703_p5 = scmp.lt.s32.totalorder %s1697_s8, %s1697_s8 }
   0xe   :  { %p1704_p6 = por %p1703_p5, %p1702_p4 }
  0x10   :  { %p1705_p7 = pnand %p1704_p6, %p1698_p3 }
  0x12   :  { %1708 = shalt.err (!%p1705_p7)
}
  0x13   :  { %s1807_s9 = smov 128   ;;  %s1808_s10 = smov 8  }
  0x14   :  { %38 = dma.hbm_to_vmem [thread:$0]  %s2096_s1, 2048, %s33_s22, [#allocation7], %s1807_s9, %s1807_s9, %s1808_s10  }
  0x15   :  { %s1709_s15 = scalar_lea.hbm %s2095_s0, 1024 }
  0x16   :  { %p1710_p8 = scmp.ne.s32.totalorder %s2095_s0, %s1709_s15  ;;  %p1713_p9 = scmp.lt.u32.totalorder %s1709_s15, %s2095_s0 }
  0x18   :  { %p1715_p10 = pnand %p1713_p9, %p1710_p8 }
  0x1a   :  { %1718 = shalt.err (!%p1715_p10)
}
  0x1b   :  { %s1719_s20 = scalar_lea.vmem %s1852_s24, 1024  ;;  %p1724_p12 = scmp.lt.s32.totalorder %s1852_s24, %s1852_s24 }
  0x1c   :  { %p1720_p11 = scmp.ne.s32.totalorder %s1852_s24, %s1719_s20  ;;  %p1725_p13 = scmp.lt.s32.totalorder %s1719_s20, %s1719_s20 }
  0x1e   :  { %p1726_p0 = por %p1725_p13, %p1724_p12 }
  0x20   :  { %p1727_p1 = pnand %p1726_p0, %p1720_p11 }
  0x22   :  { %1730 = shalt.err (!%p1727_p1)
}
  0x23   :  { %26 = dma.hbm_to_vmem [thread:$0]  %s2095_s0, 1024, %s1852_s24, [#allocation4], %s1807_s9, %s1807_s9, %s1808_s10  }
  0x24   :  { %s1809_s22 = smov [#allocation8]   ;;  %s1810_s25 = smov [#allocation9]  }
  0x25   :  { %s44_s23 = sshll.u32 %s1809_s22, 4  ;;  %s58_s26 = sshll.u32 %s1810_s25, 4  ;;  %s45_s23 = int_to_ptr.vmem [resolvable:$true] %s44_s23  ;;  %s1889_s26 = int_to_ptr.vmem [resolvable:$true] %s58_s26 }
  0x26   :  { %s1731_s29 = scalar_lea.hbm %s2097_s2, 512 }
  0x27   :  { %p1732_p2 = scmp.ne.s32.totalorder %s2097_s2, %s1731_s29  ;;  %p1735_p3 = scmp.lt.u32.totalorder %s1731_s29, %s2097_s2 }
  0x29   :  { %p1737_p4 = pnand %p1735_p3, %p1732_p2 }
  0x2b   :  { %1740 = shalt.err (!%p1737_p4)
}
  0x2c   :  { %s1741_s0 = scalar_lea.vmem %s45_s23, 512  ;;  %p1746_p6 = scmp.lt.s32.totalorder %s45_s23, %s45_s23 }
  0x2d   :  { %p1742_p5 = scmp.ne.s32.totalorder %s45_s23, %s1741_s0  ;;  %p1747_p7 = scmp.lt.s32.totalorder %s1741_s0, %s1741_s0 }
  0x2f   :  { %p1748_p8 = por %p1747_p7, %p1746_p6 }
  0x31   :  { %p1749_p9 = pnand %p1748_p8, %p1742_p5 }
  0x33   :  { %1752 = shalt.err (!%p1749_p9)
}
  0x34   :  { %50 = dma.hbm_to_vmem [thread:$0]  %s2097_s2, 512, %s45_s23, [#allocation7], %s1807_s9, %s1807_s9, %s1808_s10  }
  0x35   :  { %s1753_s15 = scalar_lea.hbm %s2099_s4, 512 }
  0x36   :  { %p1754_p10 = scmp.ne.s32.totalorder %s2099_s4, %s1753_s15  ;;  %p1757_p11 = scmp.lt.u32.totalorder %s1753_s15, %s2099_s4 }
  0x38   :  { %p1759_p12 = pnand %p1757_p11, %p1754_p10 }
  0x3a   :  { %1762 = shalt.err (!%p1759_p12)
}
  0x3b   :  { %s1763_s20 = scalar_lea.vmem %s1889_s26, 512  ;;  %p1768_p0 = scmp.lt.s32.totalorder %s1889_s26, %s1889_s26 }
  0x3c   :  { %p1764_p13 = scmp.ne.s32.totalorder %s1889_s26, %s1763_s20  ;;  %p1769_p1 = scmp.lt.s32.totalorder %s1763_s20, %s1763_s20 }
  0x3e   :  { %p1770_p2 = por %p1769_p1, %p1768_p0 }
  0x40   :  { %p1771_p3 = pnand %p1770_p2, %p1764_p13 }
  0x42   :  { %1774 = shalt.err (!%p1771_p3)
}
  0x43   :  { %64 = dma.hbm_to_vmem [thread:$0]  %s2099_s4, 512, %s1889_s26, [#allocation10], %s1807_s9, %s1807_s9, %s1808_s10  }
  0x44   :  { %1797 = dma.done.wait [#allocation4], 1024  }
  0x45   :  { %1798 = vsyncadd [#allocation4], 4294966272 }
  0x46   :  { %1799 = dma.done.wait [#allocation7], 2560  }
  0x47   :  { %1800 = vsyncadd [#allocation7], 4294964736 }
  0x48   :  { %1801 = dma.done.wait [#allocation10], 512  }
  0x49   :  { %1802 = vsyncadd [#allocation10], 4294966784  ;;  %v1811_v0 = vmov 0.0|0.0   ;;  %vm1812_vm0 = vmmov 0   ;;  %v1813_v1 = vmov 0.0   ;;  %v87_v2 = vld [vmem:[#allocation6] sm:$0xff] }
  0x4a   :  { %1529 = vmatprep.subr.bf16.mxu1 %v1811_v0  ;;  %1402 = vmatprep.mubr.msk.f32.mxu1 %vm1812_vm0, %v1813_v1  ;;  %v88_v3 = vld [vmem:[#allocation6 + $0x8] sm:$0xff]  ;;  %v89_v4 = vld [vmem:[#allocation6 + $0x10] sm:$0xff]  ;;  %v90_v6 = vld [vmem:[#allocation6 + $0x18] sm:$0xff]  ;;  %s1815_s22 = smov 64   ;;  %vm228_vm1 = vcmask 261120  }
  0x4b   :  { %v1491_v5 = vpack.c.bf16 %v88_v3, %v87_v2  ;;  %v1495_v7 = vpack.c.bf16 %v90_v6, %v89_v4  ;;  %v91_v8 = vld [vmem:[#allocation6 + $0x20] sm:$0xff]  ;;  %v92_v9 = vld [vmem:[#allocation6 + $0x28] sm:$0xff]  ;;  %v93_v11 = vld [vmem:[#allocation6 + $0x30] sm:$0xff] }
  0x4c   :  { %v1499_v10 = vpack.c.bf16 %v92_v9, %v91_v8  ;;  %v79_v12 = vld [vmem:[#allocation3] sm:$0xff]  ;;  %v94_v13 = vld [vmem:[#allocation6 + $0x38] sm:$0xff]  ;;  %v224_v15 = vld [vmem:[#allocation8 + $0x8] sm:$0xff] }
  0x4d   :  { %1492 = vmatprep.subr.bf16.mxu0 %v1491_v5  ;;  %1371 = vmatprep.mubr.f32.mxu0 %v79_v12  ;;  %v223_v14 = vld [vmem:[#allocation8] sm:$0xff]  ;;  %v225_v17 = vld [vmem:[#allocation8 + $0x10] sm:$0xff]  ;;  %v226_v18 = vld [vmem:[#allocation8 + $0x18] sm:$0xff]  ;;  %v1503_v19 = vpack.c.bf16 %v94_v13, %v93_v11 }
  0x4e   :  { %1494 = vmatpush3.bf16.msra.mxu0 %v1491_v5  ;;  %v1929_v16 = vpack.c.bf16 %v224_v15, %v223_v14  ;;  %v95_v20 = vld [vmem:[#allocation6 + $0x40] sm:$0xff]  ;;  %v96_v21 = vld [vmem:[#allocation6 + $0x48] sm:$0xff]  ;;  %v1933_v22 = vpack.c.bf16 %v226_v18, %v225_v17  ;;  %v97_v24 = vld [vmem:[#allocation6 + $0x50] sm:$0xff] }
  0x4f   :  { %1496 = vmatprep.subr.bf16.mxu0 %v1495_v7  ;;  %v1507_v23 = vpack.c.bf16 %v96_v21, %v95_v20  ;;  %v98_v25 = vld [vmem:[#allocation6 + $0x58] sm:$0xff]  ;;  %v99_v27 = vld [vmem:[#allocation6 + $0x60] sm:$0xff]  ;;  %v100_v28 = vld [vmem:[#allocation6 + $0x68] sm:$0xff] }
  0x50   :  { %1531 = vmatpush3.bf16.msra.mxu1 %v1929_v16  ;;  %v1511_v26 = vpack.c.bf16 %v98_v25, %v97_v24  ;;  %v1515_v29 = vpack.c.bf16 %v100_v28, %v99_v27  ;;  %v101_v30 = vld [vmem:[#allocation6 + $0x70] sm:$0xff]  ;;  %v102_v31 = vld [vmem:[#allocation6 + $0x78] sm:$0xff]  ;;  %v80_v33 = vld [vmem:[#allocation3 + $0x8] sm:$0xff] }
  0x51   :  { %1532 = vmatprep.subr.bf16.mxu1 %v1811_v0  ;;  %v1519_v32 = vpack.c.bf16 %v102_v31, %v101_v30  ;;  %v81_v34 = vld [vmem:[#allocation3 + $0x10] sm:$0xff]  ;;  %v82_v35 = vld [vmem:[#allocation3 + $0x18] sm:$0xff]  ;;  %v83_v36 = vld [vmem:[#allocation3 + $0x20] sm:$0xff] }
  0x52   :  { %1498 = vmatpush3.bf16.msra.mxu0 %v1495_v7  ;;  %v84_v37 = vld [vmem:[#allocation3 + $0x28] sm:$0xff]  ;;  %v85_v38 = vld [vmem:[#allocation3 + $0x30] sm:$0xff]  ;;  %v86_v39 = vld [vmem:[#allocation3 + $0x38] sm:$0xff] }
  0x53   :  { %1500 = vmatprep.subr.bf16.mxu0 %v1499_v10  ;;  %v1230_v40 = vld [vmem:[%s2098_s3] ss:$0 sm:$0xff]  ;;  %s1814_s3 = smov 32  }
  0x54   :  { %1534 = vmatpush3.bf16.msra.mxu1 %v1933_v22 }
  0x55   :  { %1535 = vmatprep.subr.bf16.mxu1 %v1811_v0 }
  0x56   :  { %1502 = vmatpush3.bf16.msra.mxu0 %v1499_v10 }
  0x57   :  { %1504 = vmatprep.subr.bf16.mxu0 %v1503_v19 }
  0x5a   :  { %1506 = vmatpush3.bf16.msra.mxu0 %v1503_v19 }
  0x5b   :  { %1508 = vmatprep.subr.bf16.mxu0 %v1507_v23 }
  0x5e   :  { %1510 = vmatpush3.bf16.msra.mxu0 %v1507_v23 }
  0x5f   :  { %1512 = vmatprep.subr.bf16.mxu0 %v1511_v26 }
  0x62   :  { %1514 = vmatpush3.bf16.msra.mxu0 %v1511_v26 }
  0x63   :  { %1516 = vmatprep.subr.bf16.mxu0 %v1515_v29 }
  0x66   :  { %1518 = vmatpush3.bf16.msra.mxu0 %v1515_v29 }
  0x67   :  { %1520 = vmatprep.subr.bf16.mxu0 %v1519_v32 }
  0x6a   :  { %1522 = vmatpush3.bf16.msra.mxu0 %v1519_v32 }
  0x6b   :  { %1523 = vmatprep.subr.bf16.mxu0 %v1811_v0 }
  0x6d   :  { %1372 = vmatmul.mubr.f32.vlgmr.msra.gmra.mrb[0].mxu0 %v80_v33 }
  0x6e   :  { %1525 = vmatpush3.bf16.msra.mxu0 %v1929_v16  ;;  %1374 = vmatprep.mubr.f32.mxu0 %v81_v34 }
  0x6f   :  { %1526 = vmatprep.subr.bf16.mxu0 %v1811_v0 }
  0x71   :  { %1375 = vmatmul.mubr.f32.gmra.mrb[2].mxu0 %v82_v35 }
  0x72   :  { %1377 = vmatprep.mubr.f32.mxu0 %v83_v36  ;;  %1528 = vmatpush3.bf16.msra.mxu0 %v1933_v22 }
  0x73   :  { %1553 = vmatprep.subr.bf16.mxu0 %v1811_v0 }
  0x75   :  { %1378 = vmatmul.mubr.f32.gmra.mrb[4].mxu0 %v84_v37 }
  0x76   :  { %1380 = vmatprep.mubr.f32.mxu0 %v85_v38 }
  0x79   :  { %1381 = vmatmul.mubr.f32.gmra.mrb[6].mxu0 %v86_v39 }
  0x7a   :  { %1391 = vmatprep.mubr.msk.f32.mxu0 %vm1812_vm0, %v1813_v1 }
  0x7d   :  { %1392 = vmatmul.mubr.f32.vlgmr.msra.gmra.mrb[8].mxu0 %v1813_v1 }
  0x7e   :  { %1555 = vmatpush3.bf16.msra.mxu0 %v1929_v16  ;;  %1446 = vmatprep.mubr.msk.f32.mxu0 %vm1812_vm0, %v1813_v1 }
  0x7f   :  { %1556 = vmatprep.subr.bf16.mxu0 %v1811_v0 }
  0x82   :  { %1558 = vmatpush3.bf16.msra.mxu0 %v1933_v22 }
  0x83   :  { %1565 = vmatprep.subr.bf16.mxu0 %v1811_v0 }
 0x140   :  { %v1373_v41 = vpop.f32.mrb[0].mxu0 }
 0x141   :  { %v182_v42 = vadd.f32 %v1373_v41, %v1230_v40  ;;  %v176_v43 = vpop.f32.mrb[1].mxu0 }
 0x142   :  { %v177_v56 = vadd.f32 %v1230_v40, %v176_v43 }
 0x144   :  { %v1376_v44 = vpop.f32.mrb[2].mxu0 }
 0x145   :  { %v1954_v45 = vadd.f32 %v1376_v44, %v1230_v40  ;;  %v186_v46 = vpop.f32.mrb[3].mxu0 }
 0x146   :  { %v1956_v47 = vadd.f32 %v1230_v40, %v186_v46 }
 0x148   :  { %v1379_v48 = vpop.f32.mrb[4].mxu0 }
 0x149   :  { %v1958_v49 = vadd.f32 %v1379_v48, %v1230_v40  ;;  %v196_v50 = vpop.f32.mrb[5].mxu0 }
 0x14a   :  { %v1960_v51 = vadd.f32 %v1230_v40, %v196_v50 }
 0x14c   :  { %v1382_v52 = vpop.f32.mrb[6].mxu0 }
 0x14d   :  { %v1962_v53 = vadd.f32 %v1382_v52, %v1230_v40  ;;  %v206_v54 = vpop.f32.mrb[7].mxu0 }
 0x14e   :  { %v1964_v55 = vadd.f32 %v1230_v40, %v206_v54 }
 0x150   :  { %v298_v57 = vpop.f32.mrb[8].mxu0 }
 0x151   :  { %v302_v58 = vadd.f32 %v298_v57, %v177_v56  ;;  %v1393_v59 = vpop.f32.mrb[9].mxu0 }
 0x153   :  { %1591 = vtanh.f32 %v302_v58  ;;  %v1231_v61 = vmul.f32 -1.442695, %v302_v58 }
 0x155   :  { %1593 = vpow2.f32 %v1231_v61 }
 0x15d   :  { %v1592_v60 = vpop.eup %1591 }
 0x15e   :  { %312 = vrot.lane.b32.xlu0 %v1592_v60, %s1814_s3 }
 0x15f   :  { %v1594_v62 = vpop.eup %1593 }
 0x160   :  { %v306_v63 = vadd.f32 1.0, %v1594_v62 }
 0x162   :  { %1595 = vrcp.f32 %v306_v63 }
 0x16c   :  { %v1596_v2 = vpop.eup %1595 }
 0x16d   :  { %v310_v5 = vmul.f32 0.0, %v1596_v2 }
 0x1d0   :  { %v313_v3 = vpop.permute.xlu0 %312 }
 0x1d1   :  { %v315_v4 = vmul.f32 %v1596_v2, %v313_v3 }
 0x1d3   :  { %317 = vrot.lane.b32.xlu0 %v315_v4, %s1814_s3 }
 0x245   :  { %v318_v6 = vpop.permute.xlu0 %317 }
 0x246   :  { %v320_v7 = vadd.f32 %v318_v6, %v310_v5 }
 0x248   :  { %1597 = vtanh.f32 %v320_v7 }
 0x252   :  { %v1598_v8 = vpop.eup %1597 }
 0x253   :  { %323 = vrot.lane.b32.xlu1 %v1598_v8, %s1814_s3 }
 0x2c5   :  { %v324_v9 = vpop.permute.xlu1 %323 }
 0x2c6   :  { %v326_v10 = vmul.f32 %v1596_v2, %v324_v9 }
 0x2c8   :  { %329 = vrot.lane.b32.xlu1 %v326_v10, %s1815_s22 }
 0x33a   :  { %v1970_v11 = vpop.permute.xlu1 %329 }
 0x33b   :  { %1403 = vmatmul.mubr.msk.f32.vlgmr.msra.gmra.mrb[0].mxu1 %vm228_vm1, %v1970_v11 }
 0x33c   :  { %1537 = vmatpush3.bf16.msra.mxu1 %v1929_v16  ;;  %1413 = vmatprep.mubr.msk.f32.mxu1 %vm1812_vm0, %v1813_v1 }
 0x33d   :  { %1538 = vmatprep.subr.bf16.mxu1 %v1811_v0 }
 0x340   :  { %1540 = vmatpush3.bf16.msra.mxu1 %v1933_v22 }
 0x341   :  { %1541 = vmatprep.subr.bf16.mxu1 %v1811_v0 }
 0x40e   :  { %v399_v12 = vpop.f32.mrb[0].mxu1 }
 0x40f   :  { %v403_v13 = vadd.f32 %v399_v12, %v182_v42  ;;  %v1404_v14 = vpop.f32.mrb[1].mxu1 }
 0x411   :  { %1599 = vtanh.f32 %v403_v13  ;;  %v1233_v17 = vmul.f32 -1.442695, %v403_v13 }
 0x413   :  { %1601 = vpow2.f32 %v1233_v17 }
 0x41b   :  { %v1600_v15 = vpop.eup %1599 }
 0x41c   :  { %413 = vrot.lane.b32.xlu0 %v1600_v15, %s1814_s3 }
 0x41d   :  { %v1602_v18 = vpop.eup %1601 }
 0x41e   :  { %v407_v19 = vadd.f32 1.0, %v1602_v18 }
 0x420   :  { %1603 = vrcp.f32 %v407_v19 }
 0x42a   :  { %v1604_v20 = vpop.eup %1603 }
 0x42b   :  { %v411_v24 = vmul.f32 %v1604_v20, %v320_v7 }
 0x48e   :  { %v414_v21 = vpop.permute.xlu0 %413 }
 0x48f   :  { %v416_v23 = vmul.f32 %v1604_v20, %v414_v21 }
 0x491   :  { %418 = vrot.lane.b32.xlu1 %v416_v23, %s1814_s3 }
 0x503   :  { %v419_v25 = vpop.permute.xlu1 %418 }
 0x504   :  { %v421_v26 = vadd.f32 %v419_v25, %v411_v24 }
 0x506   :  { %1605 = vtanh.f32 %v421_v26 }
 0x510   :  { %v1606_v27 = vpop.eup %1605 }
 0x511   :  { %424 = vrot.lane.b32.xlu0 %v1606_v27, %s1814_s3 }
 0x583   :  { %v425_v28 = vpop.permute.xlu0 %424 }
 0x584   :  { %v427_v29 = vmul.f32 %v1604_v20, %v425_v28 }
 0x586   :  { %430 = vrot.lane.b32.xlu1 %v427_v29, %s1815_s22 }
 0x5f8   :  { %v1984_v30 = vpop.permute.xlu1 %430 }
 0x5f9   :  { %1414 = vmatmul.mubr.msk.f32.vlgmr.msra.gmra.mrb[2].mxu1 %vm228_vm1, %v1984_v30 }
 0x5fa   :  { %1543 = vmatpush3.bf16.msra.mxu1 %v1929_v16  ;;  %1424 = vmatprep.mubr.msk.f32.mxu1 %vm1812_vm0, %v1813_v1 }
 0x5fb   :  { %1544 = vmatprep.subr.bf16.mxu1 %v1811_v0 }
 0x5fe   :  { %1546 = vmatpush3.bf16.msra.mxu1 %v1933_v22 }
 0x5ff   :  { %1547 = vmatprep.subr.bf16.mxu1 %v1811_v0 }
 0x6cc   :  { %v500_v31 = vpop.f32.mrb[2].mxu1 }
 0x6cd   :  { %v504_v32 = vadd.f32 %v500_v31, %v1956_v47  ;;  %v1415_v33 = vpop.f32.mrb[3].mxu1 }
 0x6cf   :  { %1607 = vtanh.f32 %v504_v32  ;;  %v1235_v35 = vmul.f32 -1.442695, %v504_v32 }
 0x6d1   :  { %1609 = vpow2.f32 %v1235_v35 }
 0x6d9   :  { %v1608_v34 = vpop.eup %1607 }
 0x6da   :  { %514 = vrot.lane.b32.xlu0 %v1608_v34, %s1814_s3 }
 0x6db   :  { %v1610_v36 = vpop.eup %1609 }
 0x6dc   :  { %v508_v37 = vadd.f32 1.0, %v1610_v36  ;;  %v1035_v36 = vld [vmem:[#allocation9 + $0x8] sm:$0xff] }
 0x6de   :  { %1611 = vrcp.f32 %v508_v37 }
 0x6e8   :  { %v1612_v38 = vpop.eup %1611 }
 0x6e9   :  { %v512_v41 = vmul.f32 %v1612_v38, %v421_v26 }
 0x74c   :  { %v515_v39 = vpop.permute.xlu0 %514 }
 0x74d   :  { %v517_v40 = vmul.f32 %v1612_v38, %v515_v39 }
 0x74f   :  { %519 = vrot.lane.b32.xlu1 %v517_v40, %s1814_s3 }
 0x7c1   :  { %v520_v42 = vpop.permute.xlu1 %519 }
 0x7c2   :  { %v522_v43 = vadd.f32 %v520_v42, %v512_v41  ;;  %v1036_v41 = vld [vmem:[#allocation9 + $0x10] sm:$0xff]  ;;  %v1037_v42 = vld [vmem:[#allocation9 + $0x18] sm:$0xff] }
 0x7c4   :  { %1613 = vtanh.f32 %v522_v43 }
 0x7ce   :  { %v1614_v44 = vpop.eup %1613 }
 0x7cf   :  { %525 = vrot.lane.b32.xlu0 %v1614_v44, %s1814_s3 }
 0x841   :  { %v526_v46 = vpop.permute.xlu0 %525 }
 0x842   :  { %v528_v47 = vmul.f32 %v1612_v38, %v526_v46 }
 0x844   :  { %531 = vrot.lane.b32.xlu1 %v528_v47, %s1815_s22 }
 0x8b6   :  { %v1999_v48 = vpop.permute.xlu1 %531 }
 0x8b7   :  { %1425 = vmatmul.mubr.msk.f32.vlgmr.msra.gmra.mrb[4].mxu1 %vm228_vm1, %v1999_v48 }
 0x8b8   :  { %1549 = vmatpush3.bf16.msra.mxu1 %v1929_v16  ;;  %1435 = vmatprep.mubr.msk.f32.mxu1 %vm1812_vm0, %v1813_v1 }
 0x8b9   :  { %1550 = vmatprep.subr.bf16.mxu1 %v1811_v0 }
 0x8bc   :  { %1552 = vmatpush3.bf16.msra.mxu1 %v1933_v22 }
 0x8bd   :  { %1559 = vmatprep.subr.bf16.mxu1 %v1811_v0 }
 0x98a   :  { %v601_v50 = vpop.f32.mrb[4].mxu1 }
 0x98b   :  { %v605_v52 = vadd.f32 %v601_v50, %v1954_v45  ;;  %v1426_v54 = vpop.f32.mrb[5].mxu1 }
 0x98d   :  { %1615 = vtanh.f32 %v605_v52  ;;  %v1237_v57 = vmul.f32 -1.442695, %v605_v52 }
 0x98f   :  { %1617 = vpow2.f32 %v1237_v57 }
 0x997   :  { %v1616_v56 = vpop.eup %1615 }
 0x998   :  { %615 = vrot.lane.b32.xlu0 %v1616_v56, %s1814_s3 }
 0x999   :  { %v1618_v58 = vpop.eup %1617 }
 0x99a   :  { %v609_v59 = vadd.f32 1.0, %v1618_v58 }
 0x99c   :  { %1619 = vrcp.f32 %v609_v59 }
 0x9a6   :  { %v1620_v60 = vpop.eup %1619 }
 0x9a7   :  { %v613_v63 = vmul.f32 %v1620_v60, %v522_v43  ;;  %v1575_v43 = vpack.c.bf16 %v1037_v42, %v1036_v41 }
 0xa0a   :  { %v616_v61 = vpop.permute.xlu0 %615 }
 0xa0b   :  { %v618_v62 = vmul.f32 %v1620_v60, %v616_v61 }
 0xa0d   :  { %620 = vrot.lane.b32.xlu1 %v618_v62, %s1814_s3 }
 0xa7f   :  { %v621_v2 = vpop.permute.xlu1 %620 }
 0xa80   :  { %v623_v3 = vadd.f32 %v621_v2, %v613_v63 }
 0xa82   :  { %1621 = vtanh.f32 %v623_v3 }
 0xa8c   :  { %v1622_v45 = vpop.eup %1621 }
 0xa8d   :  { %626 = vrot.lane.b32.xlu0 %v1622_v45, %s1814_s3 }
 0xaff   :  { %v627_v4 = vpop.permute.xlu0 %626 }
 0xb00   :  { %v629_v5 = vmul.f32 %v1620_v60, %v627_v4 }
 0xb02   :  { %632 = vrot.lane.b32.xlu1 %v629_v5, %s1815_s22 }
 0xb74   :  { %v2014_v6 = vpop.permute.xlu1 %632 }
 0xb75   :  { %1436 = vmatmul.mubr.msk.f32.vlgmr.msra.gmra.mrb[6].mxu1 %vm228_vm1, %v2014_v6 }
 0xb76   :  { %1561 = vmatpush3.bf16.msra.mxu1 %v1929_v16  ;;  %1457 = vmatprep.mubr.msk.f32.mxu1 %vm1812_vm0, %v1813_v1 }
 0xb77   :  { %1562 = vmatprep.subr.bf16.mxu1 %v1811_v0 }
 0xb7a   :  { %1564 = vmatpush3.bf16.msra.mxu1 %v1933_v22 }
 0xc48   :  { %v702_v7 = vpop.f32.mrb[6].mxu1 }
 0xc49   :  { %v706_v8 = vadd.f32 %v702_v7, %v1960_v51  ;;  %v1437_v9 = vpop.f32.mrb[7].mxu1 }
 0xc4b   :  { %1623 = vtanh.f32 %v706_v8  ;;  %v1239_v12 = vmul.f32 -1.442695, %v706_v8 }
 0xc4d   :  { %1625 = vpow2.f32 %v1239_v12 }
 0xc55   :  { %v1624_v10 = vpop.eup %1623 }
 0xc56   :  { %716 = vrot.lane.b32.xlu0 %v1624_v10, %s1814_s3 }
 0xc57   :  { %v1626_v13 = vpop.eup %1625 }
 0xc58   :  { %v710_v14 = vadd.f32 1.0, %v1626_v13 }
 0xc5a   :  { %1627 = vrcp.f32 %v710_v14 }
 0xc64   :  { %v1628_v15 = vpop.eup %1627 }
 0xc65   :  { %v714_v19 = vmul.f32 %v1628_v15, %v623_v3 }
 0xcc8   :  { %v717_v17 = vpop.permute.xlu0 %716 }
 0xcc9   :  { %v719_v18 = vmul.f32 %v1628_v15, %v717_v17 }
 0xccb   :  { %721 = vrot.lane.b32.xlu1 %v719_v18, %s1814_s3 }
 0xd3d   :  { %v722_v20 = vpop.permute.xlu1 %721 }
 0xd3e   :  { %v724_v21 = vadd.f32 %v722_v20, %v714_v19 }
 0xd40   :  { %1629 = vtanh.f32 %v724_v21 }
 0xd4a   :  { %v1630_v51 = vpop.eup %1629 }
 0xd4b   :  { %727 = vrot.lane.b32.xlu0 %v1630_v51, %s1814_s3 }
 0xdbd   :  { %v728_v23 = vpop.permute.xlu0 %727 }
 0xdbe   :  { %v730_v24 = vmul.f32 %v1628_v15, %v728_v23 }
 0xdc0   :  { %733 = vrot.lane.b32.xlu1 %v730_v24, %s1815_s22 }
 0xe32   :  { %v734_v25 = vpop.permute.xlu1 %733 }
 0xe33   :  { %1447 = vmatmul.mubr.msk.f32.vlgmr.msra.gmra.mrb[10].mxu0 %vm228_vm1, %v734_v25 }
 0xe34   :  { %1567 = vmatpush3.bf16.msra.mxu0 %v1929_v16  ;;  %1468 = vmatprep.mubr.msk.f32.mxu0 %vm1812_vm0, %v1813_v1 }
 0xe35   :  { %1568 = vmatprep.subr.bf16.mxu0 %v1811_v0 }
 0xe38   :  { %1570 = vmatpush3.bf16.msra.mxu0 %v1933_v22 }
 0xf06   :  { %v803_v26 = vpop.f32.mrb[10].mxu0 }
 0xf07   :  { %v807_v27 = vadd.f32 %v803_v26, %v1958_v49  ;;  %v1448_v28 = vpop.f32.mrb[11].mxu0  ;;  %v1034_v49 = vld [vmem:[#allocation9] sm:$0xff] }
 0xf08   :  { %v1571_v37 = vpack.c.bf16 %v1035_v36, %v1034_v49 }
 0xf09   :  { %1631 = vtanh.f32 %v807_v27  ;;  %v1241_v31 = vmul.f32 -1.442695, %v807_v27 }
 0xf0a   :  { %1572 = vmatprep.subr.bf16.mxu1 %v1571_v37 }
 0xf0b   :  { %1633 = vpow2.f32 %v1241_v31 }
 0xf13   :  { %v1632_v29 = vpop.eup %1631 }
 0xf14   :  { %817 = vrot.lane.b32.xlu0 %v1632_v29, %s1814_s3 }
 0xf15   :  { %v1634_v32 = vpop.eup %1633 }
 0xf16   :  { %v811_v33 = vadd.f32 1.0, %v1634_v32 }
 0xf18   :  { %1635 = vrcp.f32 %v811_v33 }
 0xf22   :  { %v1636_v16 = vpop.eup %1635 }
 0xf23   :  { %v815_v0 = vmul.f32 %v1636_v16, %v724_v21 }
 0xf86   :  { %v818_v34 = vpop.permute.xlu0 %817 }
 0xf87   :  { %v820_v1 = vmul.f32 %v1636_v16, %v818_v34 }
 0xf89   :  { %822 = vrot.lane.b32.xlu1 %v820_v1, %s1814_s3 }
 0xffb   :  { %v823_v22 = vpop.permute.xlu1 %822 }
 0xffc   :  { %v2037_v35 = vadd.f32 %v823_v22, %v815_v0 }
 0xffe   :  { %1637 = vtanh.f32 %v2037_v35 }
0x1008   :  { %v1638_v38 = vpop.eup %1637 }
0x1009   :  { %828 = vrot.lane.b32.xlu0 %v1638_v38, %s1814_s3 }
0x107b   :  { %v829_v39 = vpop.permute.xlu0 %828 }
0x107c   :  { %v831_v40 = vmul.f32 %v1636_v16, %v829_v39 }
0x107e   :  { %834 = vrot.lane.b32.xlu1 %v831_v40, %s1815_s22 }
0x10f0   :  { %v835_v44 = vpop.permute.xlu1 %834 }
0x10f1   :  { %1458 = vmatmul.mubr.msk.f32.vlgmr.msra.gmra.mrb[8].mxu1 %vm228_vm1, %v835_v44 }
0x10f2   :  { %1574 = vmatpush3.bf16.msra.mxu1 %v1571_v37  ;;  %1479 = vmatprep.mubr.msk.f32.mxu1 %vm228_vm1, %v1970_v11  ;;  %v2057_v11 = vld [vmem:[%s2100_s5] ss:$0 sm:$0xff]  ;;  %s1816_s5 = smov [#allocation11]  }
0x10f3   :  { %1576 = vmatprep.subr.bf16.mxu1 %v1575_v43  ;;  %s1216_s26 = sshll.u32 %s1816_s5, 4  ;;  %s1217_s26 = int_to_ptr.vmem [resolvable:$true] %s1216_s26 }
0x10f4   :  { %s1775_s27 = scalar_lea.vmem %s1217_s26, 1024  ;;  %p1780_p5 = scmp.lt.s32.totalorder %s1217_s26, %s1217_s26 }
0x10f5   :  { %p1776_p4 = scmp.ne.s32.totalorder %s1217_s26, %s1775_s27  ;;  %p1781_p6 = scmp.lt.s32.totalorder %s1775_s27, %s1775_s27 }
0x10f6   :  { %1578 = vmatpush3.bf16.msra.mxu1 %v1575_v43 }
0x10f7   :  { %p1782_p7 = por %p1781_p6, %p1780_p5 }
0x10f9   :  { %1480 = vmatmul.mubr.msk.f32.vlgmr.msra.gmra.mrb[10].mxu1 %vm228_vm1, %v1984_v30  ;;  %p1783_p8 = pnand %p1782_p7, %p1776_p4 }
0x10fa   :  { %1482 = vmatprep.mubr.msk.f32.mxu1 %vm228_vm1, %v1999_v48 }
0x10fd   :  { %1483 = vmatmul.mubr.msk.f32.gmra.mrb[12].mxu1 %vm228_vm1, %v2014_v6 }
0x10fe   :  { %1485 = vmatprep.mubr.msk.f32.mxu1 %vm228_vm1, %v734_v25 }
0x1101   :  { %1486 = vmatmul.mubr.msk.f32.gmra.mrb[14].mxu1 %vm228_vm1, %v835_v44 }
0x11c4   :  { %v904_v46 = vpop.f32.mrb[8].mxu1 }
0x11c5   :  { %v908_v47 = vadd.f32 %v904_v46, %v1964_v55  ;;  %v1459_v50 = vpop.f32.mrb[9].mxu1 }
0x11c7   :  { %1639 = vtanh.f32 %v908_v47  ;;  %v1243_v27 = vmul.f32 -1.442695, %v908_v47 }
0x11cc   :  { %v1481_v30 = vpop.f32.mrb[10].mxu1 }
0x11cd   :  { %v1122_v48 = vadd.f32 %v1481_v30, %v2057_v11  ;;  %v1116_v52 = vpop.f32.mrb[11].mxu1 }
0x11ce   :  { %v1117_v54 = vadd.f32 %v2057_v11, %v1116_v52 }
0x11cf   :  { %v1256_v56 = vmul.f32 -1.442695, %v1122_v48 }
0x11d0   :  { %v1255_v57 = vmul.f32 -1.442695, %v1117_v54  ;;  %v1484_v58 = vpop.f32.mrb[12].mxu1 }
0x11d1   :  { %v1640_v59 = vpop.eup %1639  ;;  %1641 = vpow2.f32 %v1256_v56  ;;  %v1132_v55 = vadd.f32 %v1484_v58, %v2057_v11  ;;  %v1126_v60 = vpop.f32.mrb[13].mxu1 }
0x11d2   :  { %1643 = vpow2.f32 %v1255_v57  ;;  %v1127_v61 = vadd.f32 %v2057_v11, %v1126_v60  ;;  %918 = vrot.lane.b32.xlu0 %v1640_v59, %s1814_s3 }
0x11d3   :  { %v1258_v62 = vmul.f32 -1.442695, %v1132_v55 }
0x11d4   :  { %v1257_v63 = vmul.f32 -1.442695, %v1127_v61  ;;  %v1487_v2 = vpop.f32.mrb[14].mxu1 }
0x11d5   :  { %1645 = vpow2.f32 %v1258_v62  ;;  %v1142_v3 = vadd.f32 %v1487_v2, %v2057_v11  ;;  %v1136_v45 = vpop.f32.mrb[15].mxu1 }
0x11d6   :  { %v1137_v4 = vadd.f32 %v2057_v11, %v1136_v45  ;;  %1647 = vpow2.f32 %v1257_v63 }
0x11d7   :  { %v1260_v5 = vmul.f32 -1.442695, %v1142_v3 }
0x11d8   :  { %v1259_v6 = vmul.f32 -1.442695, %v1137_v4 }
0x11d9   :  { %1649 = vpow2.f32 %v1260_v5 }
0x11da   :  { %1651 = vpow2.f32 %v1259_v6 }
0x11db   :  { %v1642_v7 = vpop.eup %1641 }
0x11dc   :  { %v1644_v8 = vpop.eup %1643  ;;  %v1180_v9 = vadd.f32 1.0, %v1642_v7 }
0x11dd   :  { %v1179_v10 = vadd.f32 1.0, %v1644_v8 }
0x11de   :  { %1653 = vrcp.f32 %v1180_v9 }
0x11df   :  { %v1646_v12 = vpop.eup %1645  ;;  %1655 = vrcp.f32 %v1179_v10 }
0x11e0   :  { %v1182_v13 = vadd.f32 1.0, %v1646_v12  ;;  %v1648_v14 = vpop.eup %1647 }
0x11e1   :  { %v1181_v15 = vadd.f32 1.0, %v1648_v14 }
0x11e2   :  { %1657 = vrcp.f32 %v1182_v13 }
0x11e3   :  { %v1650_v17 = vpop.eup %1649  ;;  %1659 = vrcp.f32 %v1181_v15 }
0x11e4   :  { %v1652_v18 = vpop.eup %1651  ;;  %v1184_v19 = vadd.f32 1.0, %v1650_v17 }
0x11e5   :  { %v1183_v20 = vadd.f32 1.0, %v1652_v18 }
0x11e6   :  { %1661 = vrcp.f32 %v1184_v19 }
0x11e7   :  { %1663 = vrcp.f32 %v1183_v20 }
0x11e8   :  { %v1654_v21 = vpop.eup %1653  ;;  %1665 = vpow2.f32 %v1243_v27 }
0x11e9   :  { %v1656_v51 = vpop.eup %1655  ;;  %1204 = vst [vmem:[#allocation11 + $0x8] sm:$0xff] %v1654_v21 }
0x11ea   :  { %1203 = vst [vmem:[#allocation11] sm:$0xff] %v1656_v51 }
0x11ec   :  { %v1658_v23 = vpop.eup %1657 }
0x11ed   :  { %1206 = vst [vmem:[#allocation11 + $0x18] sm:$0xff] %v1658_v23  ;;  %v1660_v24 = vpop.eup %1659 }
0x11ee   :  { %1205 = vst [vmem:[#allocation11 + $0x10] sm:$0xff] %v1660_v24 }
0x11f0   :  { %v1662_v25 = vpop.eup %1661 }
0x11f1   :  { %v1664_v26 = vpop.eup %1663  ;;  %1208 = vst [vmem:[#allocation11 + $0x28] sm:$0xff] %v1662_v25 }
0x11f2   :  { %1207 = vst [vmem:[#allocation11 + $0x20] sm:$0xff] %v1664_v26  ;;  %v1666_v28 = vpop.eup %1665 }
0x11f3   :  { %v912_v29 = vadd.f32 1.0, %v1666_v28 }
0x11f5   :  { %1667 = vrcp.f32 %v912_v29 }
0x11ff   :  { %v1668_v31 = vpop.eup %1667 }
0x1200   :  { %v916_v16 = vmul.f32 %v1668_v31, %v2037_v35 }
0x1244   :  { %v919_v32 = vpop.permute.xlu0 %918 }
0x1245   :  { %v921_v33 = vmul.f32 %v1668_v31, %v919_v32 }
0x1247   :  { %923 = vrot.lane.b32.xlu1 %v921_v33, %s1814_s3 }
0x12b9   :  { %v924_v34 = vpop.permute.xlu1 %923 }
0x12ba   :  { %v926_v1 = vadd.f32 %v924_v34, %v916_v16 }
0x12bc   :  { %1669 = vtanh.f32 %v926_v1 }
0x12c6   :  { %v1670_v0 = vpop.eup %1669 }
0x12c7   :  { %929 = vrot.lane.b32.xlu0 %v1670_v0, %s1814_s3 }
0x1339   :  { %v930_v22 = vpop.permute.xlu0 %929 }
0x133a   :  { %v932_v49 = vmul.f32 %v1668_v31, %v930_v22 }
0x133c   :  { %935 = vrot.lane.b32.xlu1 %v932_v49, %s1815_s22 }
0x13ae   :  { %v936_v36 = vpop.permute.xlu1 %935 }
0x13af   :  { %1469 = vmatmul.mubr.msk.f32.vlgmr.msra.gmra.mrb[12].mxu0 %vm228_vm1, %v936_v36  ;;  %1488 = vmatprep.mubr.msk.f32.mxu1 %vm228_vm1, %v936_v36 }
0x1482   :  { %v1005_v37 = vpop.f32.mrb[12].mxu0 }
0x1483   :  { %v1009_v38 = vadd.f32 %v1005_v37, %v1962_v53  ;;  %v1470_v39 = vpop.f32.mrb[13].mxu0 }
0x1485   :  { %1671 = vtanh.f32 %v1009_v38  ;;  %v1245_v40 = vmul.f32 -1.442695, %v1009_v38 }
0x1487   :  { %1673 = vpow2.f32 %v1245_v40 }
0x148f   :  { %v1672_v35 = vpop.eup %1671 }
0x1490   :  { %1019 = vrot.lane.b32.xlu0 %v1672_v35, %s1814_s3 }
0x1491   :  { %v1674_v41 = vpop.eup %1673 }
0x1492   :  { %v1013_v42 = vadd.f32 1.0, %v1674_v41 }
0x1494   :  { %1675 = vrcp.f32 %v1013_v42 }
0x149e   :  { %v1676_v43 = vpop.eup %1675 }
0x149f   :  { %v1017_v47 = vmul.f32 %v1676_v43, %v926_v1 }
0x1502   :  { %v1020_v44 = vpop.permute.xlu0 %1019 }
0x1503   :  { %v1022_v46 = vmul.f32 %v1676_v43, %v1020_v44 }
0x1505   :  { %1024 = vrot.lane.b32.xlu1 %v1022_v46, %s1814_s3 }
0x1577   :  { %v1025_v50 = vpop.permute.xlu1 %1024 }
0x1578   :  { %v1027_v30 = vadd.f32 %v1025_v50, %v1017_v47 }
0x157a   :  { %1677 = vtanh.f32 %v1027_v30 }
0x1584   :  { %v1678_v53 = vpop.eup %1677 }
0x1585   :  { %1030 = vrot.lane.b32.xlu0 %v1678_v53, %s1814_s3 }
0x15f7   :  { %v1031_v48 = vpop.permute.xlu0 %1030 }
0x15f8   :  { %v1033_v52 = vmul.f32 %v1676_v43, %v1031_v48 }
0x15fa   :  { %1046 = vrot.lane.b32.xlu1 %v1033_v52, %s1815_s22 }
0x166c   :  { %v1047_v54 = vpop.permute.xlu1 %1046 }
0x166d   :  { %1489 = vmatmul.mubr.msk.f32.gmra.mrb[16].mxu1 %vm228_vm1, %v1047_v54 }
0x1740   :  { %v1490_v56 = vpop.f32.mrb[16].mxu1 }
0x1741   :  { %v1152_v57 = vadd.f32 %v1490_v56, %v2057_v11  ;;  %v1146_v58 = vpop.f32.mrb[17].mxu1 }
0x1742   :  { %v1147_v59 = vadd.f32 %v2057_v11, %v1146_v58 }
0x1743   :  { %v1262_v55 = vmul.f32 -1.442695, %v1152_v57 }
0x1744   :  { %v1261_v60 = vmul.f32 -1.442695, %v1147_v59 }
0x1745   :  { %1679 = vpow2.f32 %v1262_v55 }
0x1746   :  { %1681 = vpow2.f32 %v1261_v60 }
0x174f   :  { %v1680_v61 = vpop.eup %1679 }
0x1750   :  { %v1682_v62 = vpop.eup %1681  ;;  %v1186_v63 = vadd.f32 1.0, %v1680_v61 }
0x1751   :  { %v1185_v2 = vadd.f32 1.0, %v1682_v62 }
0x1752   :  { %1683 = vrcp.f32 %v1186_v63 }
0x1753   :  { %1685 = vrcp.f32 %v1185_v2 }
0x175c   :  { %v1684_v3 = vpop.eup %1683 }
0x175d   :  { %v1686_v45 = vpop.eup %1685  ;;  %1210 = vst [vmem:[#allocation11 + $0x38] sm:$0xff] %v1684_v3 }
0x175e   :  { %1209 = vst [vmem:[#allocation11 + $0x30] sm:$0xff] %v1686_v45 }
0x175f   :  { %1786 = shalt.err (!%p1783_p8)
}
0x1760   :  { %s1787_s30 = scalar_lea.hbm %s2101_s6, 1024 }
0x1761   :  { %p1788_p9 = scmp.ne.s32.totalorder %s2101_s6, %s1787_s30  ;;  %p1791_p10 = scmp.lt.u32.totalorder %s1787_s30, %s2101_s6 }
0x1763   :  { %p1793_p11 = pnand %p1791_p10, %p1788_p9 }
0x1765   :  { %1796 = shalt.err (!%p1793_p11)
}
0x1766   :  { %1222 = dma.vmem_to_hbm [thread:$0]  %s1217_s26, 1024, %s2101_s6, [#allocation5], %s1807_s9, %s1807_s9, %s1808_s10  }
0x1767   :  { %1803 = dma.done.wait [#allocation5], 1024  }
0x1768   :  { %1804 = vsyncadd [#allocation5], 4294966272 }
0x1769   :  { %1226 = vsyncpa [#allocation4], 1 }
0x176a   :  { %1227 = vsyncpa [#allocation7], 1 }
0x176b   :  { %1228 = vsyncpa [#allocation10], 1 }
0x176c   :  { %1229 = vsyncpa [#allocation5], 1 }

</bundles_post_ra>
